<compile_context>
chip_gen: v7x
topology: tpu7x:2x2x1
jax: 0.10.0
libtpu: 0.0.40
codegen_flags: <defaults>
</compile_context>

<pallas_src>
import functools

import jax
import jax.numpy as jnp
from jax.experimental import pallas as pl
from jax.experimental.pallas import tpu as pltpu

_TP_CAP = 2048     # lane-dense pixel-tile cap (power-of-two multiple of 128)
_EPS = 1e-5


def _round_up(x, m):
    return (x + m - 1) // m * m


def _pick_tp(n_pix):
    """Largest power-of-two multiple of 128 that is <= min(cap, n_pix)."""
    tp = 128
    while tp * 2 <= _TP_CAP and tp * 2 <= n_pix:
        tp *= 2
    return tp


def _lane_fold(x):
    """Fold the lane axis down to 128 with vreg-aligned halving adds."""
    w = x.shape[-1]
    while w > 128:
        w //= 2
        x = x[:, :w] + x[:, w:]
    return x


def _stats_kernel(logits_ref, labels_ref, out_ref, *, n_pix):
    """Accumulate CE / Dice statistics over lane-dense pixel tiles.

    logits_ref: (C, TP)    classes on sublanes, pixels on lanes (input dtype).
    labels_ref: (1, TP)    int32 class labels (lanes past n_pix are masked).
    out_ref   : (ROWS, 128) f32 VMEM-resident accumulator:
                rows [0:C)   sum(p * onehot)   (Dice intersection)
                rows [C:2C)  sum(p)
                rows [2C:3C) sum(onehot)
                row  3C      CE sum
    """
    t = pl.program_id(1)

    @pl.when(t == 0)
    def _():
        out_ref[...] = jnp.zeros_like(out_ref)

    c_dim, tp = logits_ref.shape
    logits = logits_ref[...].astype(jnp.float32)            # (C, TP)
    labels = labels_ref[...]                                 # (1, TP) int32

    # lane validity: global pixel index < n_pix (masks tile padding/garbage)
    lane = jax.lax.broadcasted_iota(jnp.int32, (1, tp), 1)
    valid = (t * tp + lane) < n_pix                          # (1, TP) bool

    # one-hot target via class iota on the sublane (class) axis
    class_ids = jax.lax.broadcasted_iota(jnp.int32, (c_dim, tp), 0)
    onehot = (class_ids == labels).astype(jnp.float32)       # (C, TP)

    # numerically stable softmax over classes: unrolled full-width VPU ops for
    # small C, sublane reductions (XLU slot) for large C.
    if c_dim <= 8:
        m = logits[0:1, :]
        for c in range(1, c_dim):
            m = jnp.maximum(m, logits[c:c + 1, :])
    else:
        m = jnp.max(logits, axis=0, keepdims=True)
    z = logits - m
    e = jnp.exp(z)
    if c_dim <= 8:
        se = e[0:1, :]
        for c in range(1, c_dim):
            se = se + e[c:c + 1, :]
    else:
        se = jnp.sum(e, axis=0, keepdims=True)
    probs = e / se                                            # (C, TP)

    # CE = log(sum exp) - z[label]
    zl = onehot * z
    if c_dim <= 8:
        z_at = zl[0:1, :]
        for c in range(1, c_dim):
            z_at = z_at + zl[c:c + 1, :]
    else:
        z_at = jnp.sum(zl, axis=0, keepdims=True)

    zero = jnp.float32(0.0)
    inter = jnp.where(valid, probs * onehot, zero)            # (C, TP)
    psum = jnp.where(valid, probs, zero)                      # (C, TP)
    tsum = jnp.where(valid, onehot, zero)                     # (C, TP)
    ce = jnp.where(valid, jnp.log(se) - z_at, zero)           # (1, TP)

    # fold lanes -> 128 before the (tiny) accumulator read-modify-write
    out_ref[0:c_dim, :] = out_ref[0:c_dim, :] + _lane_fold(inter)
    out_ref[c_dim:2 * c_dim, :] = out_ref[c_dim:2 * c_dim, :] + _lane_fold(psum)
    out_ref[2 * c_dim:3 * c_dim, :] = (
        out_ref[2 * c_dim:3 * c_dim, :] + _lane_fold(tsum))
    out_ref[3 * c_dim:3 * c_dim + 1, :] = (
        out_ref[3 * c_dim:3 * c_dim + 1, :] + _lane_fold(ce))


def _scale_stats(logits, labels, n_pix):
    """One pallas_call: per-batch / per-class / 128-lane CE + Dice partials."""
    n, c, p_total = logits.shape
    tp = _pick_tp(p_total)
    n_tiles = pl.cdiv(p_total, tp)
    rows = _round_up(3 * c + 1, 8)

    # explicit VMEM budget (matters only for very large C / TP); headroom 4x
    need = 2 * tp * (c * logits.dtype.itemsize + 4) + rows * 128 * 4
    vmem_limit = int(min(max(4 * need, 16 * 2 ** 20), 40 * 2 ** 20))

    out = pl.pallas_call(
        functools.partial(_stats_kernel, n_pix=n_pix),
        out_shape=jax.ShapeDtypeStruct((n, rows, 128), jnp.float32),
        grid=(n, n_tiles),
        in_specs=[
            pl.BlockSpec((None, c, tp), lambda bn, bt: (bn, 0, bt)),
            pl.BlockSpec((None, 1, tp), lambda bn, bt: (bn, 0, bt)),
        ],
        out_specs=pl.BlockSpec((None, rows, 128), lambda bn, bt: (bn, 0, 0)),
        compiler_params=pltpu.CompilerParams(
            # batch axis parallel -> 2-TensorCore split on v7x; pixel tiles
            # revisit the per-batch accumulator block, so they are arbitrary.
            dimension_semantics=("parallel", "arbitrary"),
            vmem_limit_bytes=vmem_limit),
    )(logits, labels)
    # tiny epilogue reduction over batch partials and the 128 lanes
    return jnp.sum(out, axis=(0, 2))                          # (rows,)


@functools.partial(jax.jit, static_argnames=("ds_scales",))
def _net_loss_impl(net_out, target, ds_scales):
    n, c, h, w = net_out.shape
    n_scales = len(ds_scales)
    target = target.astype(jnp.int32)

    per_scale_losses = []
    for s in ds_scales:
        f = int(round(1.0 / float(s)))
        if f > 1:
            # TODO(synk): nearest downsampling via XLA strided slice (small
            #             copies); could be moved in-kernel with strided DMA.
            lg = net_out[:, :, ::f, ::f]
            tg = target[:, ::f, ::f]
        else:
            lg, tg = net_out, target                          # no copy
        hs, ws = lg.shape[2], lg.shape[3]
        p = hs * ws
        lg = lg.reshape(n, c, p)
        tg = tg.reshape(n, 1, p)
        if p < 128:  # tiny slab: pad to one full 128-lane tile (negligible)
            lg = jnp.pad(lg, ((0, 0), (0, 0), (0, 128 - p)))
            tg = jnp.pad(tg, ((0, 0), (0, 0), (0, 128 - p)),
                         constant_values=-1)

        stats = _scale_stats(lg, tg, p)
        inter = stats[0:c]
        psum = stats[c:2 * c]
        tsum = stats[2 * c:3 * c]
        ce_sum = stats[3 * c]

        eps = jnp.float32(_EPS)
        dice = (2.0 * inter + eps) / (psum + tsum + eps)
        dice_loss = 1.0 - jnp.mean(dice)
        ce_mean = ce_sum / jnp.float32(n * p)                 # static count
        per_scale_losses.append(ce_mean + dice_loss)

    raw_w = jnp.asarray([0.5 ** i for i in range(n_scales)], jnp.float32)
    weights = raw_w / jnp.sum(raw_w)
    return jnp.sum(weights * jnp.stack(per_scale_losses))


def net_loss(net_out, target, ds_scales):
    """NetLoss.forward equivalent.

    net_out: (N, C, H, W) float logits (NCHW, like PyTorch; bf16 or f32)
    target : (N, H, W)   integer class labels
    """
    return _net_loss_impl(net_out, target,
                          tuple(float(s) for s in ds_scales))


if __name__ == "__main__":
    key = jax.random.PRNGKey(0)
    k1, k2 = jax.random.split(key)

    N, C, H, W = 2, 4, 16, 16
    ds_scales = (1.0, 0.5, 0.25)

    net_out = jax.random.normal(k1, (N, C, H, W), dtype=jnp.float32)
    target = jax.random.randint(k2, (N, H, W), 0, C, dtype=jnp.int32)

    loss = net_loss(net_out, target, ds_scales)
    jax.block_until_ready(loss)
    assert loss.shape == () and bool(jnp.isfinite(loss))
    print("KERNEL_OK")
</pallas_src>

<mosaic_0001>
module attributes {stable_mosaic.version = 11 : i64} {
  func.func @_stats_kernel(%arg0: i32, %arg1: i32, %arg2: memref<1x4x128xf32, #tpu.memory_space<vmem>>, %arg3: memref<1x1x128xi32, #tpu.memory_space<vmem>>, %arg4: memref<1x16x128xf32, #tpu.memory_space<vmem>>) attributes {dimension_semantics = [#tpu.dimension_semantics<parallel>, #tpu.dimension_semantics<arbitrary>], iteration_bounds = array<i64: 2, 1>, scalar_prefetch = 0 : i64, scratch_operands = 0 : i64, tpu.core_type = #tpu.core_type<tc>, window_params = [{transform_indices = @transform_0, window_bounds = array<i64: 1, 4, 128>}, {transform_indices = @transform_1, window_bounds = array<i64: 1, 1, 128>}, {transform_indices = @transform_2, window_bounds = array<i64: 1, 16, 128>}]} {
    %c0_i32 = arith.constant 0 : i32
    %0 = arith.cmpi eq, %arg1, %c0_i32 : i32
    %1 = arith.extui %0 : i1 to i32
    %c0_i32_0 = arith.constant 0 : i32
    %2 = arith.cmpi ne, %1, %c0_i32_0 : i32
    scf.if %2 {
      %cst_30 = arith.constant 0.000000e+00 : f32
      %86 = vector.broadcast %cst_30 : f32 to vector<16x128xf32>
      %c0_31 = arith.constant 0 : index
      %c0_32 = arith.constant 0 : index
      %c0_33 = arith.constant 0 : index
      %87 = vector.load %arg4[%c0_31, %c0_32, %c0_33] : memref<1x16x128xf32, #tpu.memory_space<vmem>>, vector<1x16x128xf32>
      %88 = vector.shape_cast %87 : vector<1x16x128xf32> to vector<16x128xf32>
      %89 = vector.shape_cast %86 : vector<16x128xf32> to vector<1x16x128xf32>
      tpu.vector_store %arg4[%c0_31, %c0_32, %c0_33], %89 {strides = array<i32>} : memref<1x16x128xf32, #tpu.memory_space<vmem>>, vector<1x16x128xf32>,
    } else {
    }
    %c0 = arith.constant 0 : index
    %c0_1 = arith.constant 0 : index
    %c0_2 = arith.constant 0 : index
    %3 = vector.load %arg2[%c0, %c0_1, %c0_2] : memref<1x4x128xf32, #tpu.memory_space<vmem>>, vector<1x4x128xf32>
    %4 = vector.shape_cast %3 : vector<1x4x128xf32> to vector<4x128xf32>
    %c0_3 = arith.constant 0 : index
    %c0_4 = arith.constant 0 : index
    %c0_5 = arith.constant 0 : index
    %5 = vector.load %arg3[%c0_3, %c0_4, %c0_5] : memref<1x1x128xi32, #tpu.memory_space<vmem>>, vector<1x1x128xi32>
    %6 = vector.shape_cast %5 : vector<1x1x128xi32> to vector<1x128xi32>
    %7 = tpu.iota {dimensions = array<i32: 1>} : vector<1x128xi32>
    %c128_i32 = arith.constant 128 : i32
    %8 = arith.muli %arg1, %c128_i32 : i32
    %9 = vector.broadcast %8 : i32 to vector<1x128xi32>
    %10 = arith.addi %9, %7 : vector<1x128xi32>
    %c64_i32 = arith.constant 64 : i32
    %11 = vector.broadcast %c64_i32 : i32 to vector<1x128xi32>
    %12 = arith.cmpi slt, %10, %11 : vector<1x128xi32>
    %13 = tpu.iota {dimensions = array<i32: 0>} : vector<4x128xi32>
    %14 = vector.broadcast %6 : vector<1x128xi32> to vector<4x128xi32>
    %15 = arith.cmpi eq, %13, %14 : vector<4x128xi32>
    %16 = arith.extui %15 : vector<4x128xi1> to vector<4x128xi32>
    %17 = arith.sitofp %16 : vector<4x128xi32> to vector<4x128xf32>
    %18 = vector.extract_strided_slice %4 {offsets = [0, 0], sizes = [1, 128], strides = [1, 1]} : vector<4x128xf32> to vector<1x128xf32>
    %19 = vector.extract_strided_slice %4 {offsets = [1, 0], sizes = [1, 128], strides = [1, 1]} : vector<4x128xf32> to vector<1x128xf32>
    %20 = arith.maximumf %18, %19 : vector<1x128xf32>
    %21 = vector.extract_strided_slice %4 {offsets = [2, 0], sizes = [1, 128], strides = [1, 1]} : vector<4x128xf32> to vector<1x128xf32>
    %22 = arith.maximumf %20, %21 : vector<1x128xf32>
    %23 = vector.extract_strided_slice %4 {offsets = [3, 0], sizes = [1, 128], strides = [1, 1]} : vector<4x128xf32> to vector<1x128xf32>
    %24 = arith.maximumf %22, %23 : vector<1x128xf32>
    %25 = vector.broadcast %24 : vector<1x128xf32> to vector<4x128xf32>
    %26 = arith.subf %4, %25 : vector<4x128xf32>
    %27 = math.exp %26 : vector<4x128xf32>
    %28 = vector.extract_strided_slice %27 {offsets = [0, 0], sizes = [1, 128], strides = [1, 1]} : vector<4x128xf32> to vector<1x128xf32>
    %29 = vector.extract_strided_slice %27 {offsets = [1, 0], sizes = [1, 128], strides = [1, 1]} : vector<4x128xf32> to vector<1x128xf32>
    %30 = arith.addf %28, %29 : vector<1x128xf32>
    %31 = vector.extract_strided_slice %27 {offsets = [2, 0], sizes = [1, 128], strides = [1, 1]} : vector<4x128xf32> to vector<1x128xf32>
    %32 = arith.addf %30, %31 : vector<1x128xf32>
    %33 = vector.extract_strided_slice %27 {offsets = [3, 0], sizes = [1, 128], strides = [1, 1]} : vector<4x128xf32> to vector<1x128xf32>
    %34 = arith.addf %32, %33 : vector<1x128xf32>
    %35 = vector.broadcast %34 : vector<1x128xf32> to vector<4x128xf32>
    %36 = arith.divf %27, %35 : vector<4x128xf32>
    %37 = arith.mulf %17, %26 : vector<4x128xf32>
    %38 = vector.extract_strided_slice %37 {offsets = [0, 0], sizes = [1, 128], strides = [1, 1]} : vector<4x128xf32> to vector<1x128xf32>
    %39 = vector.extract_strided_slice %37 {offsets = [1, 0], sizes = [1, 128], strides = [1, 1]} : vector<4x128xf32> to vector<1x128xf32>
    %40 = arith.addf %38, %39 : vector<1x128xf32>
    %41 = vector.extract_strided_slice %37 {offsets = [2, 0], sizes = [1, 128], strides = [1, 1]} : vector<4x128xf32> to vector<1x128xf32>
    %42 = arith.addf %40, %41 : vector<1x128xf32>
    %43 = vector.extract_strided_slice %37 {offsets = [3, 0], sizes = [1, 128], strides = [1, 1]} : vector<4x128xf32> to vector<1x128xf32>
    %44 = arith.addf %42, %43 : vector<1x128xf32>
    %45 = arith.mulf %36, %17 : vector<4x128xf32>
    %cst = arith.constant 0.000000e+00 : f32
    %46 = vector.shape_cast %12 : vector<1x128xi1> to vector<1x128xi1>
    %47 = vector.broadcast %46 : vector<1x128xi1> to vector<4x128xi1>
    %48 = vector.broadcast %cst : f32 to vector<4x128xf32>
    %49 = arith.select %47, %45, %48 : vector<4x128xi1>, vector<4x128xf32>
    %cst_6 = arith.constant 0.000000e+00 : f32
    %50 = vector.shape_cast %12 : vector<1x128xi1> to vector<1x128xi1>
    %51 = vector.broadcast %50 : vector<1x128xi1> to vector<4x128xi1>
    %52 = vector.broadcast %cst_6 : f32 to vector<4x128xf32>
    %53 = arith.select %51, %36, %52 : vector<4x128xi1>, vector<4x128xf32>
    %cst_7 = arith.constant 0.000000e+00 : f32
    %54 = vector.shape_cast %12 : vector<1x128xi1> to vector<1x128xi1>
    %55 = vector.broadcast %54 : vector<1x128xi1> to vector<4x128xi1>
    %56 = vector.broadcast %cst_7 : f32 to vector<4x128xf32>
    %57 = arith.select %55, %17, %56 : vector<4x128xi1>, vector<4x128xf32>
    %58 = math.log %34 : vector<1x128xf32>
    %59 = arith.subf %58, %44 : vector<1x128xf32>
    %cst_8 = arith.constant 0.000000e+00 : f32
    %60 = vector.broadcast %cst_8 : f32 to vector<1x128xf32>
    %61 = arith.select %12, %59, %60 : vector<1x128xi1>, vector<1x128xf32>
    %c0_9 = arith.constant 0 : index
    %c0_10 = arith.constant 0 : index
    %c0_11 = arith.constant 0 : index
    %62 = vector.load %arg4[%c0_9, %c0_10, %c0_11] : memref<1x16x128xf32, #tpu.memory_space<vmem>>, vector<1x4x128xf32>
    %63 = vector.shape_cast %62 : vector<1x4x128xf32> to vector<4x128xf32>
    %64 = arith.addf %63, %49 : vector<4x128xf32>
    %c0_12 = arith.constant 0 : index
    %c0_13 = arith.constant 0 : index
    %c0_14 = arith.constant 0 : index
    %65 = vector.load %arg4[%c0_12, %c0_13, %c0_14] : memref<1x16x128xf32, #tpu.memory_space<vmem>>, vector<1x4x128xf32>
    %66 = vector.shape_cast %65 : vector<1x4x128xf32> to vector<4x128xf32>
    %67 = vector.shape_cast %64 : vector<4x128xf32> to vector<1x4x128xf32>
    tpu.vector_store %arg4[%c0_12, %c0_13, %c0_14], %67 {strides = array<i32>} : memref<1x16x128xf32, #tpu.memory_space<vmem>>, vector<1x4x128xf32>,
    %c0_15 = arith.constant 0 : index
    %c4 = arith.constant 4 : index
    %c0_16 = arith.constant 0 : index
    %68 = vector.load %arg4[%c0_15, %c4, %c0_16] : memref<1x16x128xf32, #tpu.memory_space<vmem>>, vector<1x4x128xf32>
    %69 = vector.shape_cast %68 : vector<1x4x128xf32> to vector<4x128xf32>
    %70 = arith.addf %69, %53 : vector<4x128xf32>
    %c0_17 = arith.constant 0 : index
    %c4_18 = arith.constant 4 : index
    %c0_19 = arith.constant 0 : index
    %71 = vector.load %arg4[%c0_17, %c4_18, %c0_19] : memref<1x16x128xf32, #tpu.memory_space<vmem>>, vector<1x4x128xf32>
    %72 = vector.shape_cast %71 : vector<1x4x128xf32> to vector<4x128xf32>
    %73 = vector.shape_cast %70 : vector<4x128xf32> to vector<1x4x128xf32>
    tpu.vector_store %arg4[%c0_17, %c4_18, %c0_19], %73 {strides = array<i32>} : memref<1x16x128xf32, #tpu.memory_space<vmem>>, vector<1x4x128xf32>,
    %c0_20 = arith.constant 0 : index
    %c8 = arith.constant 8 : index
    %c0_21 = arith.constant 0 : index
    %74 = vector.load %arg4[%c0_20, %c8, %c0_21] : memref<1x16x128xf32, #tpu.memory_space<vmem>>, vector<1x4x128xf32>
    %75 = vector.shape_cast %74 : vector<1x4x128xf32> to vector<4x128xf32>
    %76 = arith.addf %75, %57 : vector<4x128xf32>
    %c0_22 = arith.constant 0 : index
    %c8_23 = arith.constant 8 : index
    %c0_24 = arith.constant 0 : index
    %77 = vector.load %arg4[%c0_22, %c8_23, %c0_24] : memref<1x16x128xf32, #tpu.memory_space<vmem>>, vector<1x4x128xf32>
    %78 = vector.shape_cast %77 : vector<1x4x128xf32> to vector<4x128xf32>
    %79 = vector.shape_cast %76 : vector<4x128xf32> to vector<1x4x128xf32>
    tpu.vector_store %arg4[%c0_22, %c8_23, %c0_24], %79 {strides = array<i32>} : memref<1x16x128xf32, #tpu.memory_space<vmem>>, vector<1x4x128xf32>,
    %c0_25 = arith.constant 0 : index
    %c12 = arith.constant 12 : index
    %c0_26 = arith.constant 0 : index
    %80 = vector.load %arg4[%c0_25, %c12, %c0_26] : memref<1x16x128xf32, #tpu.memory_space<vmem>>, vector<1x1x128xf32>
    %81 = vector.shape_cast %80 : vector<1x1x128xf32> to vector<1x128xf32>
    %82 = arith.addf %81, %61 : vector<1x128xf32>
    %c0_27 = arith.constant 0 : index
    %c12_28 = arith.constant 12 : index
    %c0_29 = arith.constant 0 : index
    %83 = vector.load %arg4[%c0_27, %c12_28, %c0_29] : memref<1x16x128xf32, #tpu.memory_space<vmem>>, vector<1x1x128xf32>
    %84 = vector.shape_cast %83 : vector<1x1x128xf32> to vector<1x128xf32>
    %85 = vector.shape_cast %82 : vector<1x128xf32> to vector<1x1x128xf32>
    tpu.vector_store %arg4[%c0_27, %c12_28, %c0_29], %85 {strides = array<i32>} : memref<1x16x128xf32, #tpu.memory_space<vmem>>, vector<1x1x128xf32>,
    return
  }
  func.func @transform_0(%arg0: i32, %arg1: i32) -> (i32, i32, i32) {
    %c0_i32 = arith.constant 0 : i32
    %c0_i32_0 = arith.constant 0 : i32
    return %arg0, %c0_i32, %arg1 : i32, i32, i32
  }
  func.func @transform_1(%arg0: i32, %arg1: i32) -> (i32, i32, i32) {
    %c0_i32 = arith.constant 0 : i32
    %c0_i32_0 = arith.constant 0 : i32
    return %arg0, %c0_i32, %arg1 : i32, i32, i32
  }
  func.func @transform_2(%arg0: i32, %arg1: i32) -> (i32, i32, i32) {
    %c0_i32 = arith.constant 0 : i32
    %c0_i32_0 = arith.constant 0 : i32
    %c0_i32_1 = arith.constant 0 : i32
    return %arg0, %c0_i32, %c0_i32_0 : i32, i32, i32
  }
}

module attributes {stable_mosaic.version = 11 : i64} {
  func.func @_stats_kernel(%arg0: i32, %arg1: i32, %arg2: memref<1x4x128xf32, #tpu.memory_space<vmem>>, %arg3: memref<1x1x128xi32, #tpu.memory_space<vmem>>, %arg4: memref<1x16x128xf32, #tpu.memory_space<vmem>>) attributes {dimension_semantics = [#tpu.dimension_semantics<parallel>, #tpu.dimension_semantics<arbitrary>], iteration_bounds = array<i64: 2, 1>, scalar_prefetch = 0 : i64, scratch_operands = 0 : i64, tpu.core_type = #tpu.core_type<tc>, window_params = [{transform_indices = @transform_0, window_bounds = array<i64: 1, 4, 128>}, {transform_indices = @transform_1, window_bounds = array<i64: 1, 1, 128>}, {transform_indices = @transform_2, window_bounds = array<i64: 1, 16, 128>}]} {
    %c0_i32 = arith.constant 0 : i32
    %0 = arith.cmpi eq, %arg1, %c0_i32 : i32
    %1 = arith.extui %0 : i1 to i32
    %c0_i32_0 = arith.constant 0 : i32
    %2 = arith.cmpi ne, %1, %c0_i32_0 : i32
    scf.if %2 {
      %cst_30 = arith.constant 0.000000e+00 : f32
      %86 = vector.broadcast %cst_30 : f32 to vector<16x128xf32>
      %c0_31 = arith.constant 0 : index
      %c0_32 = arith.constant 0 : index
      %c0_33 = arith.constant 0 : index
      %87 = vector.load %arg4[%c0_31, %c0_32, %c0_33] : memref<1x16x128xf32, #tpu.memory_space<vmem>>, vector<1x16x128xf32>
      %88 = vector.shape_cast %87 : vector<1x16x128xf32> to vector<16x128xf32>
      %89 = vector.shape_cast %86 : vector<16x128xf32> to vector<1x16x128xf32>
      tpu.vector_store %arg4[%c0_31, %c0_32, %c0_33], %89 {strides = array<i32>} : memref<1x16x128xf32, #tpu.memory_space<vmem>>, vector<1x16x128xf32>,
    } else {
    }
    %c0 = arith.constant 0 : index
    %c0_1 = arith.constant 0 : index
    %c0_2 = arith.constant 0 : index
    %3 = vector.load %arg2[%c0, %c0_1, %c0_2] : memref<1x4x128xf32, #tpu.memory_space<vmem>>, vector<1x4x128xf32>
    %4 = vector.shape_cast %3 : vector<1x4x128xf32> to vector<4x128xf32>
    %c0_3 = arith.constant 0 : index
    %c0_4 = arith.constant 0 : index
    %c0_5 = arith.constant 0 : index
    %5 = vector.load %arg3[%c0_3, %c0_4, %c0_5] : memref<1x1x128xi32, #tpu.memory_space<vmem>>, vector<1x1x128xi32>
    %6 = vector.shape_cast %5 : vector<1x1x128xi32> to vector<1x128xi32>
    %7 = tpu.iota {dimensions = array<i32: 1>} : vector<1x128xi32>
    %c128_i32 = arith.constant 128 : i32
    %8 = arith.muli %arg1, %c128_i32 : i32
    %9 = vector.broadcast %8 : i32 to vector<1x128xi32>
    %10 = arith.addi %9, %7 : vector<1x128xi32>
    %c16_i32 = arith.constant 16 : i32
    %11 = vector.broadcast %c16_i32 : i32 to vector<1x128xi32>
    %12 = arith.cmpi slt, %10, %11 : vector<1x128xi32>
    %13 = tpu.iota {dimensions = array<i32: 0>} : vector<4x128xi32>
    %14 = vector.broadcast %6 : vector<1x128xi32> to vector<4x128xi32>
    %15 = arith.cmpi eq, %13, %14 : vector<4x128xi32>
    %16 = arith.extui %15 : vector<4x128xi1> to vector<4x128xi32>
    %17 = arith.sitofp %16 : vector<4x128xi32> to vector<4x128xf32>
    %18 = vector.extract_strided_slice %4 {offsets = [0, 0], sizes = [1, 128], strides = [1, 1]} : vector<4x128xf32> to vector<1x128xf32>
    %19 = vector.extract_strided_slice %4 {offsets = [1, 0], sizes = [1, 128], strides = [1, 1]} : vector<4x128xf32> to vector<1x128xf32>
    %20 = arith.maximumf %18, %19 : vector<1x128xf32>
    %21 = vector.extract_strided_slice %4 {offsets = [2, 0], sizes = [1, 128], strides = [1, 1]} : vector<4x128xf32> to vector<1x128xf32>
    %22 = arith.maximumf %20, %21 : vector<1x128xf32>
    %23 = vector.extract_strided_slice %4 {offsets = [3, 0], sizes = [1, 128], strides = [1, 1]} : vector<4x128xf32> to vector<1x128xf32>
    %24 = arith.maximumf %22, %23 : vector<1x128xf32>
    %25 = vector.broadcast %24 : vector<1x128xf32> to vector<4x128xf32>
    %26 = arith.subf %4, %25 : vector<4x128xf32>
    %27 = math.exp %26 : vector<4x128xf32>
    %28 = vector.extract_strided_slice %27 {offsets = [0, 0], sizes = [1, 128], strides = [1, 1]} : vector<4x128xf32> to vector<1x128xf32>
    %29 = vector.extract_strided_slice %27 {offsets = [1, 0], sizes = [1, 128], strides = [1, 1]} : vector<4x128xf32> to vector<1x128xf32>
    %30 = arith.addf %28, %29 : vector<1x128xf32>
    %31 = vector.extract_strided_slice %27 {offsets = [2, 0], sizes = [1, 128], strides = [1, 1]} : vector<4x128xf32> to vector<1x128xf32>
    %32 = arith.addf %30, %31 : vector<1x128xf32>
    %33 = vector.extract_strided_slice %27 {offsets = [3, 0], sizes = [1, 128], strides = [1, 1]} : vector<4x128xf32> to vector<1x128xf32>
    %34 = arith.addf %32, %33 : vector<1x128xf32>
    %35 = vector.broadcast %34 : vector<1x128xf32> to vector<4x128xf32>
    %36 = arith.divf %27, %35 : vector<4x128xf32>
    %37 = arith.mulf %17, %26 : vector<4x128xf32>
    %38 = vector.extract_strided_slice %37 {offsets = [0, 0], sizes = [1, 128], strides = [1, 1]} : vector<4x128xf32> to vector<1x128xf32>
    %39 = vector.extract_strided_slice %37 {offsets = [1, 0], sizes = [1, 128], strides = [1, 1]} : vector<4x128xf32> to vector<1x128xf32>
    %40 = arith.addf %38, %39 : vector<1x128xf32>
    %41 = vector.extract_strided_slice %37 {offsets = [2, 0], sizes = [1, 128], strides = [1, 1]} : vector<4x128xf32> to vector<1x128xf32>
    %42 = arith.addf %40, %41 : vector<1x128xf32>
    %43 = vector.extract_strided_slice %37 {offsets = [3, 0], sizes = [1, 128], strides = [1, 1]} : vector<4x128xf32> to vector<1x128xf32>
    %44 = arith.addf %42, %43 : vector<1x128xf32>
    %45 = arith.mulf %36, %17 : vector<4x128xf32>
    %cst = arith.constant 0.000000e+00 : f32
    %46 = vector.shape_cast %12 : vector<1x128xi1> to vector<1x128xi1>
    %47 = vector.broadcast %46 : vector<1x128xi1> to vector<4x128xi1>
    %48 = vector.broadcast %cst : f32 to vector<4x128xf32>
    %49 = arith.select %47, %45, %48 : vector<4x128xi1>, vector<4x128xf32>
    %cst_6 = arith.constant 0.000000e+00 : f32
    %50 = vector.shape_cast %12 : vector<1x128xi1> to vector<1x128xi1>
    %51 = vector.broadcast %50 : vector<1x128xi1> to vector<4x128xi1>
    %52 = vector.broadcast %cst_6 : f32 to vector<4x128xf32>
    %53 = arith.select %51, %36, %52 : vector<4x128xi1>, vector<4x128xf32>
    %cst_7 = arith.constant 0.000000e+00 : f32
    %54 = vector.shape_cast %12 : vector<1x128xi1> to vector<1x128xi1>
    %55 = vector.broadcast %54 : vector<1x128xi1> to vector<4x128xi1>
    %56 = vector.broadcast %cst_7 : f32 to vector<4x128xf32>
    %57 = arith.select %55, %17, %56 : vector<4x128xi1>, vector<4x128xf32>
    %58 = math.log %34 : vector<1x128xf32>
    %59 = arith.subf %58, %44 : vector<1x128xf32>
    %cst_8 = arith.constant 0.000000e+00 : f32
    %60 = vector.broadcast %cst_8 : f32 to vector<1x128xf32>
    %61 = arith.select %12, %59, %60 : vector<1x128xi1>, vector<1x128xf32>
    %c0_9 = arith.constant 0 : index
    %c0_10 = arith.constant 0 : index
    %c0_11 = arith.constant 0 : index
    %62 = vector.load %arg4[%c0_9, %c0_10, %c0_11] : memref<1x16x128xf32, #tpu.memory_space<vmem>>, vector<1x4x128xf32>
    %63 = vector.shape_cast %62 : vector<1x4x128xf32> to vector<4x128xf32>
    %64 = arith.addf %63, %49 : vector<4x128xf32>
    %c0_12 = arith.constant 0 : index
    %c0_13 = arith.constant 0 : index
    %c0_14 = arith.constant 0 : index
    %65 = vector.load %arg4[%c0_12, %c0_13, %c0_14] : memref<1x16x128xf32, #tpu.memory_space<vmem>>, vector<1x4x128xf32>
    %66 = vector.shape_cast %65 : vector<1x4x128xf32> to vector<4x128xf32>
    %67 = vector.shape_cast %64 : vector<4x128xf32> to vector<1x4x128xf32>
    tpu.vector_store %arg4[%c0_12, %c0_13, %c0_14], %67 {strides = array<i32>} : memref<1x16x128xf32, #tpu.memory_space<vmem>>, vector<1x4x128xf32>,
    %c0_15 = arith.constant 0 : index
    %c4 = arith.constant 4 : index
    %c0_16 = arith.constant 0 : index
    %68 = vector.load %arg4[%c0_15, %c4, %c0_16] : memref<1x16x128xf32, #tpu.memory_space<vmem>>, vector<1x4x128xf32>
    %69 = vector.shape_cast %68 : vector<1x4x128xf32> to vector<4x128xf32>
    %70 = arith.addf %69, %53 : vector<4x128xf32>
    %c0_17 = arith.constant 0 : index
    %c4_18 = arith.constant 4 : index
    %c0_19 = arith.constant 0 : index
    %71 = vector.load %arg4[%c0_17, %c4_18, %c0_19] : memref<1x16x128xf32, #tpu.memory_space<vmem>>, vector<1x4x128xf32>
    %72 = vector.shape_cast %71 : vector<1x4x128xf32> to vector<4x128xf32>
    %73 = vector.shape_cast %70 : vector<4x128xf32> to vector<1x4x128xf32>
    tpu.vector_store %arg4[%c0_17, %c4_18, %c0_19], %73 {strides = array<i32>} : memref<1x16x128xf32, #tpu.memory_space<vmem>>, vector<1x4x128xf32>,
    %c0_20 = arith.constant 0 : index
    %c8 = arith.constant 8 : index
    %c0_21 = arith.constant 0 : index
    %74 = vector.load %arg4[%c0_20, %c8, %c0_21] : memref<1x16x128xf32, #tpu.memory_space<vmem>>, vector<1x4x128xf32>
    %75 = vector.shape_cast %74 : vector<1x4x128xf32> to vector<4x128xf32>
    %76 = arith.addf %75, %57 : vector<4x128xf32>
    %c0_22 = arith.constant 0 : index
    %c8_23 = arith.constant 8 : index
    %c0_24 = arith.constant 0 : index
    %77 = vector.load %arg4[%c0_22, %c8_23, %c0_24] : memref<1x16x128xf32, #tpu.memory_space<vmem>>, vector<1x4x128xf32>
    %78 = vector.shape_cast %77 : vector<1x4x128xf32> to vector<4x128xf32>
    %79 = vector.shape_cast %76 : vector<4x128xf32> to vector<1x4x128xf32>
    tpu.vector_store %arg4[%c0_22, %c8_23, %c0_24], %79 {strides = array<i32>} : memref<1x16x128xf32, #tpu.memory_space<vmem>>, vector<1x4x128xf32>,
    %c0_25 = arith.constant 0 : index
    %c12 = arith.constant 12 : index
    %c0_26 = arith.constant 0 : index
    %80 = vector.load %arg4[%c0_25, %c12, %c0_26] : memref<1x16x128xf32, #tpu.memory_space<vmem>>, vector<1x1x128xf32>
    %81 = vector.shape_cast %80 : vector<1x1x128xf32> to vector<1x128xf32>
    %82 = arith.addf %81, %61 : vector<1x128xf32>
    %c0_27 = arith.constant 0 : index
    %c12_28 = arith.constant 12 : index
    %c0_29 = arith.constant 0 : index
    %83 = vector.load %arg4[%c0_27, %c12_28, %c0_29] : memref<1x16x128xf32, #tpu.memory_space<vmem>>, vector<1x1x128xf32>
    %84 = vector.shape_cast %83 : vector<1x1x128xf32> to vector<1x128xf32>
    %85 = vector.shape_cast %82 : vector<1x128xf32> to vector<1x1x128xf32>
    tpu.vector_store %arg4[%c0_27, %c12_28, %c0_29], %85 {strides = array<i32>} : memref<1x16x128xf32, #tpu.memory_space<vmem>>, vector<1x1x128xf32>,
    return
  }
  func.func @transform_0(%arg0: i32, %arg1: i32) -> (i32, i32, i32) {
    %c0_i32 = arith.constant 0 : i32
    %c0_i32_0 = arith.constant 0 : i32
    return %arg0, %c0_i32, %arg1 : i32, i32, i32
  }
  func.func @transform_1(%arg0: i32, %arg1: i32) -> (i32, i32, i32) {
    %c0_i32 = arith.constant 0 : i32
    %c0_i32_0 = arith.constant 0 : i32
    return %arg0, %c0_i32, %arg1 : i32, i32, i32
  }
  func.func @transform_2(%arg0: i32, %arg1: i32) -> (i32, i32, i32) {
    %c0_i32 = arith.constant 0 : i32
    %c0_i32_0 = arith.constant 0 : i32
    %c0_i32_1 = arith.constant 0 : i32
    return %arg0, %c0_i32, %c0_i32_0 : i32, i32, i32
  }
}

module attributes {stable_mosaic.version = 11 : i64} {
  func.func @_stats_kernel(%arg0: i32, %arg1: i32, %arg2: memref<1x4x256xf32, #tpu.memory_space<vmem>>, %arg3: memref<1x1x256xi32, #tpu.memory_space<vmem>>, %arg4: memref<1x16x128xf32, #tpu.memory_space<vmem>>) attributes {dimension_semantics = [#tpu.dimension_semantics<parallel>, #tpu.dimension_semantics<arbitrary>], iteration_bounds = array<i64: 2, 1>, scalar_prefetch = 0 : i64, scratch_operands = 0 : i64, tpu.core_type = #tpu.core_type<tc>, window_params = [{transform_indices = @transform_0, window_bounds = array<i64: 1, 4, 256>}, {transform_indices = @transform_1, window_bounds = array<i64: 1, 1, 256>}, {transform_indices = @transform_2, window_bounds = array<i64: 1, 16, 128>}]} {
    %c0_i32 = arith.constant 0 : i32
    %0 = arith.cmpi eq, %arg1, %c0_i32 : i32
    %1 = arith.extui %0 : i1 to i32
    %c0_i32_0 = arith.constant 0 : i32
    %2 = arith.cmpi ne, %1, %c0_i32_0 : i32
    scf.if %2 {
      %cst_31 = arith.constant 0.000000e+00 : f32
      %98 = vector.broadcast %cst_31 : f32 to vector<16x128xf32>
      %c0_32 = arith.constant 0 : index
      %c0_33 = arith.constant 0 : index
      %c0_34 = arith.constant 0 : index
      %99 = vector.load %arg4[%c0_32, %c0_33, %c0_34] : memref<1x16x128xf32, #tpu.memory_space<vmem>>, vector<1x16x128xf32>
      %100 = vector.shape_cast %99 : vector<1x16x128xf32> to vector<16x128xf32>
      %101 = vector.shape_cast %98 : vector<16x128xf32> to vector<1x16x128xf32>
      tpu.vector_store %arg4[%c0_32, %c0_33, %c0_34], %101 {strides = array<i32>} : memref<1x16x128xf32, #tpu.memory_space<vmem>>, vector<1x16x128xf32>,
    } else {
    }
    %c0 = arith.constant 0 : index
    %c0_1 = arith.constant 0 : index
    %c0_2 = arith.constant 0 : index
    %3 = vector.load %arg2[%c0, %c0_1, %c0_2] : memref<1x4x256xf32, #tpu.memory_space<vmem>>, vector<1x4x256xf32>
    %4 = vector.shape_cast %3 : vector<1x4x256xf32> to vector<4x256xf32>
    %c0_3 = arith.constant 0 : index
    %c0_4 = arith.constant 0 : index
    %c0_5 = arith.constant 0 : index
    %5 = vector.load %arg3[%c0_3, %c0_4, %c0_5] : memref<1x1x256xi32, #tpu.memory_space<vmem>>, vector<1x1x256xi32>
    %6 = vector.shape_cast %5 : vector<1x1x256xi32> to vector<1x256xi32>
    %7 = tpu.iota {dimensions = array<i32: 1>} : vector<1x256xi32>
    %c256_i32 = arith.constant 256 : i32
    %8 = arith.muli %arg1, %c256_i32 : i32
    %9 = vector.broadcast %8 : i32 to vector<1x256xi32>
    %10 = arith.addi %9, %7 : vector<1x256xi32>
    %c256_i32_6 = arith.constant 256 : i32
    %11 = vector.broadcast %c256_i32_6 : i32 to vector<1x256xi32>
    %12 = arith.cmpi slt, %10, %11 : vector<1x256xi32>
    %13 = tpu.iota {dimensions = array<i32: 0>} : vector<4x256xi32>
    %14 = vector.broadcast %6 : vector<1x256xi32> to vector<4x256xi32>
    %15 = arith.cmpi eq, %13, %14 : vector<4x256xi32>
    %16 = arith.extui %15 : vector<4x256xi1> to vector<4x256xi32>
    %17 = arith.sitofp %16 : vector<4x256xi32> to vector<4x256xf32>
    %18 = vector.extract_strided_slice %4 {offsets = [0, 0], sizes = [1, 256], strides = [1, 1]} : vector<4x256xf32> to vector<1x256xf32>
    %19 = vector.extract_strided_slice %4 {offsets = [1, 0], sizes = [1, 256], strides = [1, 1]} : vector<4x256xf32> to vector<1x256xf32>
    %20 = arith.maximumf %18, %19 : vector<1x256xf32>
    %21 = vector.extract_strided_slice %4 {offsets = [2, 0], sizes = [1, 256], strides = [1, 1]} : vector<4x256xf32> to vector<1x256xf32>
    %22 = arith.maximumf %20, %21 : vector<1x256xf32>
    %23 = vector.extract_strided_slice %4 {offsets = [3, 0], sizes = [1, 256], strides = [1, 1]} : vector<4x256xf32> to vector<1x256xf32>
    %24 = arith.maximumf %22, %23 : vector<1x256xf32>
    %25 = vector.broadcast %24 : vector<1x256xf32> to vector<4x256xf32>
    %26 = arith.subf %4, %25 : vector<4x256xf32>
    %27 = math.exp %26 : vector<4x256xf32>
    %28 = vector.extract_strided_slice %27 {offsets = [0, 0], sizes = [1, 256], strides = [1, 1]} : vector<4x256xf32> to vector<1x256xf32>
    %29 = vector.extract_strided_slice %27 {offsets = [1, 0], sizes = [1, 256], strides = [1, 1]} : vector<4x256xf32> to vector<1x256xf32>
    %30 = arith.addf %28, %29 : vector<1x256xf32>
    %31 = vector.extract_strided_slice %27 {offsets = [2, 0], sizes = [1, 256], strides = [1, 1]} : vector<4x256xf32> to vector<1x256xf32>
    %32 = arith.addf %30, %31 : vector<1x256xf32>
    %33 = vector.extract_strided_slice %27 {offsets = [3, 0], sizes = [1, 256], strides = [1, 1]} : vector<4x256xf32> to vector<1x256xf32>
    %34 = arith.addf %32, %33 : vector<1x256xf32>
    %35 = vector.broadcast %34 : vector<1x256xf32> to vector<4x256xf32>
    %36 = arith.divf %27, %35 : vector<4x256xf32>
    %37 = arith.mulf %17, %26 : vector<4x256xf32>
    %38 = vector.extract_strided_slice %37 {offsets = [0, 0], sizes = [1, 256], strides = [1, 1]} : vector<4x256xf32> to vector<1x256xf32>
    %39 = vector.extract_strided_slice %37 {offsets = [1, 0], sizes = [1, 256], strides = [1, 1]} : vector<4x256xf32> to vector<1x256xf32>
    %40 = arith.addf %38, %39 : vector<1x256xf32>
    %41 = vector.extract_strided_slice %37 {offsets = [2, 0], sizes = [1, 256], strides = [1, 1]} : vector<4x256xf32> to vector<1x256xf32>
    %42 = arith.addf %40, %41 : vector<1x256xf32>
    %43 = vector.extract_strided_slice %37 {offsets = [3, 0], sizes = [1, 256], strides = [1, 1]} : vector<4x256xf32> to vector<1x256xf32>
    %44 = arith.addf %42, %43 : vector<1x256xf32>
    %45 = arith.mulf %36, %17 : vector<4x256xf32>
    %cst = arith.constant 0.000000e+00 : f32
    %46 = vector.shape_cast %12 : vector<1x256xi1> to vector<1x256xi1>
    %47 = vector.broadcast %46 : vector<1x256xi1> to vector<4x256xi1>
    %48 = vector.broadcast %cst : f32 to vector<4x256xf32>
    %49 = arith.select %47, %45, %48 : vector<4x256xi1>, vector<4x256xf32>
    %cst_7 = arith.constant 0.000000e+00 : f32
    %50 = vector.shape_cast %12 : vector<1x256xi1> to vector<1x256xi1>
    %51 = vector.broadcast %50 : vector<1x256xi1> to vector<4x256xi1>
    %52 = vector.broadcast %cst_7 : f32 to vector<4x256xf32>
    %53 = arith.select %51, %36, %52 : vector<4x256xi1>, vector<4x256xf32>
    %cst_8 = arith.constant 0.000000e+00 : f32
    %54 = vector.shape_cast %12 : vector<1x256xi1> to vector<1x256xi1>
    %55 = vector.broadcast %54 : vector<1x256xi1> to vector<4x256xi1>
    %56 = vector.broadcast %cst_8 : f32 to vector<4x256xf32>
    %57 = arith.select %55, %17, %56 : vector<4x256xi1>, vector<4x256xf32>
    %58 = math.log %34 : vector<1x256xf32>
    %59 = arith.subf %58, %44 : vector<1x256xf32>
    %cst_9 = arith.constant 0.000000e+00 : f32
    %60 = vector.broadcast %cst_9 : f32 to vector<1x256xf32>
    %61 = arith.select %12, %59, %60 : vector<1x256xi1>, vector<1x256xf32>
    %c0_10 = arith.constant 0 : index
    %c0_11 = arith.constant 0 : index
    %c0_12 = arith.constant 0 : index
    %62 = vector.load %arg4[%c0_10, %c0_11, %c0_12] : memref<1x16x128xf32, #tpu.memory_space<vmem>>, vector<1x4x128xf32>
    %63 = vector.shape_cast %62 : vector<1x4x128xf32> to vector<4x128xf32>
    %64 = vector.extract_strided_slice %49 {offsets = [0, 0], sizes = [4, 128], strides = [1, 1]} : vector<4x256xf32> to vector<4x128xf32>
    %65 = vector.extract_strided_slice %49 {offsets = [0, 128], sizes = [4, 128], strides = [1, 1]} : vector<4x256xf32> to vector<4x128xf32>
    %66 = arith.addf %64, %65 : vector<4x128xf32>
    %67 = arith.addf %63, %66 : vector<4x128xf32>
    %c0_13 = arith.constant 0 : index
    %c0_14 = arith.constant 0 : index
    %c0_15 = arith.constant 0 : index
    %68 = vector.load %arg4[%c0_13, %c0_14, %c0_15] : memref<1x16x128xf32, #tpu.memory_space<vmem>>, vector<1x4x128xf32>
    %69 = vector.shape_cast %68 : vector<1x4x128xf32> to vector<4x128xf32>
    %70 = vector.shape_cast %67 : vector<4x128xf32> to vector<1x4x128xf32>
    tpu.vector_store %arg4[%c0_13, %c0_14, %c0_15], %70 {strides = array<i32>} : memref<1x16x128xf32, #tpu.memory_space<vmem>>, vector<1x4x128xf32>,
    %c0_16 = arith.constant 0 : index
    %c4 = arith.constant 4 : index
    %c0_17 = arith.constant 0 : index
    %71 = vector.load %arg4[%c0_16, %c4, %c0_17] : memref<1x16x128xf32, #tpu.memory_space<vmem>>, vector<1x4x128xf32>
    %72 = vector.shape_cast %71 : vector<1x4x128xf32> to vector<4x128xf32>
    %73 = vector.extract_strided_slice %53 {offsets = [0, 0], sizes = [4, 128], strides = [1, 1]} : vector<4x256xf32> to vector<4x128xf32>
    %74 = vector.extract_strided_slice %53 {offsets = [0, 128], sizes = [4, 128], strides = [1, 1]} : vector<4x256xf32> to vector<4x128xf32>
    %75 = arith.addf %73, %74 : vector<4x128xf32>
    %76 = arith.addf %72, %75 : vector<4x128xf32>
    %c0_18 = arith.constant 0 : index
    %c4_19 = arith.constant 4 : index
    %c0_20 = arith.constant 0 : index
    %77 = vector.load %arg4[%c0_18, %c4_19, %c0_20] : memref<1x16x128xf32, #tpu.memory_space<vmem>>, vector<1x4x128xf32>
    %78 = vector.shape_cast %77 : vector<1x4x128xf32> to vector<4x128xf32>
    %79 = vector.shape_cast %76 : vector<4x128xf32> to vector<1x4x128xf32>
    tpu.vector_store %arg4[%c0_18, %c4_19, %c0_20], %79 {strides = array<i32>} : memref<1x16x128xf32, #tpu.memory_space<vmem>>, vector<1x4x128xf32>,
    %c0_21 = arith.constant 0 : index
    %c8 = arith.constant 8 : index
    %c0_22 = arith.constant 0 : index
    %80 = vector.load %arg4[%c0_21, %c8, %c0_22] : memref<1x16x128xf32, #tpu.memory_space<vmem>>, vector<1x4x128xf32>
    %81 = vector.shape_cast %80 : vector<1x4x128xf32> to vector<4x128xf32>
    %82 = vector.extract_strided_slice %57 {offsets = [0, 0], sizes = [4, 128], strides = [1, 1]} : vector<4x256xf32> to vector<4x128xf32>
    %83 = vector.extract_strided_slice %57 {offsets = [0, 128], sizes = [4, 128], strides = [1, 1]} : vector<4x256xf32> to vector<4x128xf32>
    %84 = arith.addf %82, %83 : vector<4x128xf32>
    %85 = arith.addf %81, %84 : vector<4x128xf32>
    %c0_23 = arith.constant 0 : index
    %c8_24 = arith.constant 8 : index
    %c0_25 = arith.constant 0 : index
    %86 = vector.load %arg4[%c0_23, %c8_24, %c0_25] : memref<1x16x128xf32, #tpu.memory_space<vmem>>, vector<1x4x128xf32>
    %87 = vector.shape_cast %86 : vector<1x4x128xf32> to vector<4x128xf32>
    %88 = vector.shape_cast %85 : vector<4x128xf32> to vector<1x4x128xf32>
    tpu.vector_store %arg4[%c0_23, %c8_24, %c0_25], %88 {strides = array<i32>} : memref<1x16x128xf32, #tpu.memory_space<vmem>>, vector<1x4x128xf32>,
    %c0_26 = arith.constant 0 : index
    %c12 = arith.constant 12 : index
    %c0_27 = arith.constant 0 : index
    %89 = vector.load %arg4[%c0_26, %c12, %c0_27] : memref<1x16x128xf32, #tpu.memory_space<vmem>>, vector<1x1x128xf32>
    %90 = vector.shape_cast %89 : vector<1x1x128xf32> to vector<1x128xf32>
    %91 = vector.extract_strided_slice %61 {offsets = [0, 0], sizes = [1, 128], strides = [1, 1]} : vector<1x256xf32> to vector<1x128xf32>
    %92 = vector.extract_strided_slice %61 {offsets = [0, 128], sizes = [1, 128], strides = [1, 1]} : vector<1x256xf32> to vector<1x128xf32>
    %93 = arith.addf %91, %92 : vector<1x128xf32>
    %94 = arith.addf %90, %93 : vector<1x128xf32>
    %c0_28 = arith.constant 0 : index
    %c12_29 = arith.constant 12 : index
    %c0_30 = arith.constant 0 : index
    %95 = vector.load %arg4[%c0_28, %c12_29, %c0_30] : memref<1x16x128xf32, #tpu.memory_space<vmem>>, vector<1x1x128xf32>
    %96 = vector.shape_cast %95 : vector<1x1x128xf32> to vector<1x128xf32>
    %97 = vector.shape_cast %94 : vector<1x128xf32> to vector<1x1x128xf32>
    tpu.vector_store %arg4[%c0_28, %c12_29, %c0_30], %97 {strides = array<i32>} : memref<1x16x128xf32, #tpu.memory_space<vmem>>, vector<1x1x128xf32>,
    return
  }
  func.func @transform_0(%arg0: i32, %arg1: i32) -> (i32, i32, i32) {
    %c0_i32 = arith.constant 0 : i32
    %c0_i32_0 = arith.constant 0 : i32
    return %arg0, %c0_i32, %arg1 : i32, i32, i32
  }
  func.func @transform_1(%arg0: i32, %arg1: i32) -> (i32, i32, i32) {
    %c0_i32 = arith.constant 0 : i32
    %c0_i32_0 = arith.constant 0 : i32
    return %arg0, %c0_i32, %arg1 : i32, i32, i32
  }
  func.func @transform_2(%arg0: i32, %arg1: i32) -> (i32, i32, i32) {
    %c0_i32 = arith.constant 0 : i32
    %c0_i32_0 = arith.constant 0 : i32
    %c0_i32_1 = arith.constant 0 : i32
    return %arg0, %c0_i32, %c0_i32_0 : i32, i32, i32
  }
}

</mosaic_0001>

<bundles_post_ra>
// kernel: _net_loss_impl.5
= control target key start
LH: loop header
LB: loop body
LE: loop exit
PB: predicated region body
PF: predicated region fallthrough
CT: control target
= control target key end

     0   :  { %s440_s9 = smov 0   ;;  %s442_s10 = smov 0   ;;  %s492_s0 = inlined_call_operand.vmem [shape: f32[2,4,128], index: 0, kind: input, shape index: {}]   ;;  %s493_s1 = inlined_call_operand.vmem [shape: s32[2,1,128], index: 1, kind: input, shape index: {}]   ;;  %s494_s2 = inlined_call_operand.vmem [shape: f32[2,16,128], index: 2, kind: output, shape index: {}]  }
   0x1   :  { %s444_s11 = smov 0  }
   0x2 LB: > { %s24_s12 = sadd.s32 1, %s418_s10  ;;  %p360_p0 = scmp.ge.s32.totalorder %s422_s11, 1  ;;  %s422_s11 = sphi %s444_s11, %s12_s11   ;;  %s418_s10 = sphi %s442_s10, %s496_s10   ;;  %s414_s9 = sphi %s440_s9, %s495_s9  }
   0x3   : > { %p26_p1 = scmp.ge.s32.totalorder %s24_s12, 2  ;;  %p141_p2 = scmp.lt.s32.totalorder %s422_s11, 3 }
   0x5   : > { %s498_s12 = smov (%p26_p1, %s24_s12), 0  ;;  %p142_p3 = pnand %p360_p0, %p141_p2 }
   0x6   : > { %p171_p4 = scmp.lt.s32.totalorder (!%p142_p3), %s414_s9, 1  ;;  %v197_v0 = vlaneseq (!%p142_p3)  ;;  %v424_v5 = vmov (!%p142_p3), 0.0  }
   0x7   : > { %145 = sbr.rel (%p142_p3) target bundleno = 72 (0x48), region = 28 }
   0x8   : > { %v198_v2 = vand.u32 (!%p142_p3), 127, %v197_v0  ;;  %v204_v4 = vshrl.u32 (!%p142_p3), %v197_v0, 7 }
   0xa   : > { %vm202_vm1 = vcmp.lt.s32.totalorder (!%p142_p3), %v198_v2, 16  ;;  %v224_v12 = vsub.s32 (!%p142_p3), 0, %v204_v4 }
   0xe   : > { %s500_s9 = smov (!%p171_p4, %s414_s9), 1 }
   0xf   : > { %s361_s13 = sshll.u32 %s500_s9, 2  ;;  %s183_s16 = scalar_lea.vmem %s493_s1, %s500_s9 }
  0x10   : > { %s177_s19 = scalar_lea.vmem %s492_s0, %s361_s13  ;;  %s368_s20 = sshll.u32 %s500_s9, 4  ;;  %v364_v1 = vld [vmem:[%s183_s16] ss:$0 sm:$0xff] }
  0x11   : > { %s467_s23 = scalar_lea.vmem %s494_s2, %s368_s20  ;;  %v195_v3 = vld [vmem:[%s177_s19] sm:$0xf]  ;;  %vm209_vm0 = vcmp.eq.s32.totalorder %v204_v4, %v364_v1 }
  0x12   : > { %193 = vst [vmem:[%s467_s23] sm:$0xff] %v424_v5  ;;  %v213_v6 = vrot.slane %v195_v3, 1  ;;  %v216_v7 = vrot.slane %v195_v3, 2  ;;  %194 = vst [vmem:[%s467_s23 + $0x8] sm:$0xff] %v424_v5  ;;  %v219_v9 = vrot.slane %v195_v3, 3  ;;  %v365_v10 = vsel %vm209_vm0, 1.0, %v424_v5 }
  0x13   : > { %v261_v13 = vsel %vm202_vm1, %v365_v10, 0.0 }
  0x14   : > { %v215_v8 = vmax.f32 %v195_v3, %v213_v6 }
  0x16   : > { %v218_v11 = vmax.f32 %v215_v8, %v216_v7 }
  0x18   : > { %v221_v14 = vmax.f32 %v218_v11, %v219_v9 }
  0x19   : > { %v272_v15 = vld [vmem:[%s467_s23 + $0x8] sm:$0xf]  ;;  %v269_v39 = vld [vmem:[%s467_s23 + $0x4] sm:$0xf]  ;;  %v275_v41 = vld [vmem:[%s467_s23 + $0xc] sm:$0x1] }
  0x1a   : > { %v225_v16 = vrot.slane %v221_v14, %v224_v12  ;;  %v273_v17 = vadd.f32 %v272_v15, %v261_v13  ;;  %v266_v43 = vld [vmem:[%s467_s23] sm:$0xf] }
  0x1c   : > { %v226_v18 = vsub.f32 %v195_v3, %v225_v16  ;;  %274 = vst [vmem:[%s467_s23 + $0x8] sm:$0xf] %v273_v17 }
  0x1e   : > { %v227_v19 = vmul.f32 1.442695, %v226_v18  ;;  %v245_v23 = vmul.f32 %v365_v10, %v226_v18 }
  0x20   : > { %394 = vpow2.f32 %v227_v19  ;;  %v247_v27 = vrot.slane %v245_v23, 1  ;;  %v250_v31 = vrot.slane %v245_v23, 2  ;;  %v253_v33 = vrot.slane %v245_v23, 3 }
  0x22   : > { %v249_v30 = vadd.f32 %v247_v27, %v245_v23 }
  0x24   : > { %v252_v32 = vadd.f32 %v250_v31, %v249_v30 }
  0x26   : > { %v255_v34 = vadd.f32 %v253_v33, %v252_v32 }
  0x2a   : > { %v395_v20 = vpop.eup %394 }
  0x2b   : > { %v230_v21 = vrot.slane %v395_v20, 1  ;;  %v233_v22 = vrot.slane %v395_v20, 2  ;;  %v236_v25 = vrot.slane %v395_v20, 3 }
  0x2d   : > { %v232_v24 = vadd.f32 %v395_v20, %v230_v21 }
  0x2f   : > { %v235_v26 = vadd.f32 %v233_v22, %v232_v24 }
  0x31   : > { %v238_v28 = vadd.f32 %v236_v25, %v235_v26 }
  0x33   : > { %v242_v29 = vrot.slane %v238_v28, %v224_v12  ;;  %396 = vlog2.f32 %v238_v28 }
  0x35   : > { %398 = vrcp.f32 %v242_v29 }
  0x3d   : > { %v397_v35 = vpop.eup %396 }
  0x3e   : > { %v263_v36 = vmul.f32 0.6931472, %v397_v35 }
  0x3f   : > { %v399_v37 = vpop.eup %398 }
  0x40   : > { %v244_v38 = vmul.f32 %v399_v37, %v395_v20  ;;  %v264_v40 = vsub.f32 %v263_v36, %v255_v34 }
  0x42   : > { %v256_v42 = vmul.f32 %v365_v10, %v244_v38  ;;  %v260_v44 = vsel %vm202_vm1, %v244_v38, 0.0  ;;  %v265_v45 = vsel %vm202_vm1, %v264_v40, 0.0 }
  0x43   : > { %v270_v46 = vadd.f32 %v269_v39, %v260_v44  ;;  %v276_v47 = vadd.f32 %v275_v41, %v265_v45 }
  0x44   : > { %v259_v48 = vsel %vm202_vm1, %v256_v42, 0.0 }
  0x45   : > { %v267_v49 = vadd.f32 %v266_v43, %v259_v48  ;;  %271 = vst [vmem:[%s467_s23 + $0x4] sm:$0xf] %v270_v46  ;;  %277 = vst [vmem:[%s467_s23 + $0xc] sm:$0x1] %v276_v47 }
  0x47   : > { %268 = vst [vmem:[%s467_s23] sm:$0xf] %v267_v49 }
  0x48 PF: > { %s12_s11 = sadd.s32 1, %s422_s11   ;;  %s495_s9 = smov %s418_s10 }
  0x49   : > { %p9_p5 = scmp.ge.s32.totalorder %s12_s11, 4   ;;  %s496_s10 = smov %s498_s12 }
  0x4b   :  { %11 = sbr.rel (!%p9_p5) target bundleno = 2 (0x2), region = 65 }

// kernel: _net_loss_impl.4
= control target key start
LH: loop header
LB: loop body
LE: loop exit
PB: predicated region body
PF: predicated region fallthrough
CT: control target
= control target key end

     0   :  { %s440_s9 = smov 0   ;;  %s442_s10 = smov 0   ;;  %s492_s0 = inlined_call_operand.vmem [shape: f32[2,4,128], index: 0, kind: input, shape index: {}]   ;;  %s493_s1 = inlined_call_operand.vmem [shape: s32[2,1,128], index: 1, kind: input, shape index: {}]   ;;  %s494_s2 = inlined_call_operand.vmem [shape: f32[2,16,128], index: 2, kind: output, shape index: {}]  }
   0x1   :  { %s444_s11 = smov 0  }
   0x2 LB: > { %s24_s12 = sadd.s32 1, %s418_s10  ;;  %p360_p0 = scmp.ge.s32.totalorder %s422_s11, 1  ;;  %s422_s11 = sphi %s444_s11, %s12_s11   ;;  %s418_s10 = sphi %s442_s10, %s496_s10   ;;  %s414_s9 = sphi %s440_s9, %s495_s9  }
   0x3   : > { %p26_p1 = scmp.ge.s32.totalorder %s24_s12, 2  ;;  %p141_p2 = scmp.lt.s32.totalorder %s422_s11, 3 }
   0x5   : > { %s498_s12 = smov (%p26_p1, %s24_s12), 0  ;;  %p142_p3 = pnand %p360_p0, %p141_p2 }
   0x6   : > { %p171_p4 = scmp.lt.s32.totalorder (!%p142_p3), %s414_s9, 1  ;;  %v197_v0 = vlaneseq (!%p142_p3)  ;;  %v424_v5 = vmov (!%p142_p3), 0.0  }
   0x7   : > { %145 = sbr.rel (%p142_p3) target bundleno = 72 (0x48), region = 28 }
   0x8   : > { %v198_v2 = vand.u32 (!%p142_p3), 127, %v197_v0  ;;  %v204_v4 = vshrl.u32 (!%p142_p3), %v197_v0, 7 }
   0xa   : > { %vm202_vm1 = vcmp.lt.s32.totalorder (!%p142_p3), %v198_v2, 64  ;;  %v224_v12 = vsub.s32 (!%p142_p3), 0, %v204_v4 }
   0xe   : > { %s500_s9 = smov (!%p171_p4, %s414_s9), 1 }
   0xf   : > { %s361_s13 = sshll.u32 %s500_s9, 2  ;;  %s183_s16 = scalar_lea.vmem %s493_s1, %s500_s9 }
  0x10   : > { %s177_s19 = scalar_lea.vmem %s492_s0, %s361_s13  ;;  %s368_s20 = sshll.u32 %s500_s9, 4  ;;  %v364_v1 = vld [vmem:[%s183_s16] ss:$0 sm:$0xff] }
  0x11   : > { %s467_s23 = scalar_lea.vmem %s494_s2, %s368_s20  ;;  %v195_v3 = vld [vmem:[%s177_s19] sm:$0xf]  ;;  %vm209_vm0 = vcmp.eq.s32.totalorder %v204_v4, %v364_v1 }
  0x12   : > { %193 = vst [vmem:[%s467_s23] sm:$0xff] %v424_v5  ;;  %v213_v6 = vrot.slane %v195_v3, 1  ;;  %v216_v7 = vrot.slane %v195_v3, 2  ;;  %194 = vst [vmem:[%s467_s23 + $0x8] sm:$0xff] %v424_v5  ;;  %v219_v9 = vrot.slane %v195_v3, 3  ;;  %v365_v10 = vsel %vm209_vm0, 1.0, %v424_v5 }
  0x13   : > { %v261_v13 = vsel %vm202_vm1, %v365_v10, 0.0 }
  0x14   : > { %v215_v8 = vmax.f32 %v195_v3, %v213_v6 }
  0x16   : > { %v218_v11 = vmax.f32 %v215_v8, %v216_v7 }
  0x18   : > { %v221_v14 = vmax.f32 %v218_v11, %v219_v9 }
  0x19   : > { %v272_v15 = vld [vmem:[%s467_s23 + $0x8] sm:$0xf]  ;;  %v269_v39 = vld [vmem:[%s467_s23 + $0x4] sm:$0xf]  ;;  %v275_v41 = vld [vmem:[%s467_s23 + $0xc] sm:$0x1] }
  0x1a   : > { %v225_v16 = vrot.slane %v221_v14, %v224_v12  ;;  %v273_v17 = vadd.f32 %v272_v15, %v261_v13  ;;  %v266_v43 = vld [vmem:[%s467_s23] sm:$0xf] }
  0x1c   : > { %v226_v18 = vsub.f32 %v195_v3, %v225_v16  ;;  %274 = vst [vmem:[%s467_s23 + $0x8] sm:$0xf] %v273_v17 }
  0x1e   : > { %v227_v19 = vmul.f32 1.442695, %v226_v18  ;;  %v245_v23 = vmul.f32 %v365_v10, %v226_v18 }
  0x20   : > { %394 = vpow2.f32 %v227_v19  ;;  %v247_v27 = vrot.slane %v245_v23, 1  ;;  %v250_v31 = vrot.slane %v245_v23, 2  ;;  %v253_v33 = vrot.slane %v245_v23, 3 }
  0x22   : > { %v249_v30 = vadd.f32 %v247_v27, %v245_v23 }
  0x24   : > { %v252_v32 = vadd.f32 %v250_v31, %v249_v30 }
  0x26   : > { %v255_v34 = vadd.f32 %v253_v33, %v252_v32 }
  0x2a   : > { %v395_v20 = vpop.eup %394 }
  0x2b   : > { %v230_v21 = vrot.slane %v395_v20, 1  ;;  %v233_v22 = vrot.slane %v395_v20, 2  ;;  %v236_v25 = vrot.slane %v395_v20, 3 }
  0x2d   : > { %v232_v24 = vadd.f32 %v395_v20, %v230_v21 }
  0x2f   : > { %v235_v26 = vadd.f32 %v233_v22, %v232_v24 }
  0x31   : > { %v238_v28 = vadd.f32 %v236_v25, %v235_v26 }
  0x33   : > { %v242_v29 = vrot.slane %v238_v28, %v224_v12  ;;  %396 = vlog2.f32 %v238_v28 }
  0x35   : > { %398 = vrcp.f32 %v242_v29 }
  0x3d   : > { %v397_v35 = vpop.eup %396 }
  0x3e   : > { %v263_v36 = vmul.f32 0.6931472, %v397_v35 }
  0x3f   : > { %v399_v37 = vpop.eup %398 }
  0x40   : > { %v244_v38 = vmul.f32 %v399_v37, %v395_v20  ;;  %v264_v40 = vsub.f32 %v263_v36, %v255_v34 }
  0x42   : > { %v256_v42 = vmul.f32 %v365_v10, %v244_v38  ;;  %v260_v44 = vsel %vm202_vm1, %v244_v38, 0.0  ;;  %v265_v45 = vsel %vm202_vm1, %v264_v40, 0.0 }
  0x43   : > { %v270_v46 = vadd.f32 %v269_v39, %v260_v44  ;;  %v276_v47 = vadd.f32 %v275_v41, %v265_v45 }
  0x44   : > { %v259_v48 = vsel %vm202_vm1, %v256_v42, 0.0 }
  0x45   : > { %v267_v49 = vadd.f32 %v266_v43, %v259_v48  ;;  %271 = vst [vmem:[%s467_s23 + $0x4] sm:$0xf] %v270_v46  ;;  %277 = vst [vmem:[%s467_s23 + $0xc] sm:$0x1] %v276_v47 }
  0x47   : > { %268 = vst [vmem:[%s467_s23] sm:$0xf] %v267_v49 }
  0x48 PF: > { %s12_s11 = sadd.s32 1, %s422_s11   ;;  %s495_s9 = smov %s418_s10 }
  0x49   : > { %p9_p5 = scmp.ge.s32.totalorder %s12_s11, 4   ;;  %s496_s10 = smov %s498_s12 }
  0x4b   :  { %11 = sbr.rel (!%p9_p5) target bundleno = 2 (0x2), region = 65 }

// kernel: _net_loss_impl.3
= control target key start
LH: loop header
LB: loop body
LE: loop exit
PB: predicated region body
PF: predicated region fallthrough
CT: control target
= control target key end

     0   :  { %s574_s9 = smov 0   ;;  %s576_s10 = smov 0   ;;  %s632_s0 = inlined_call_operand.vmem [shape: f32[2,4,256], index: 0, kind: input, shape index: {}]   ;;  %s633_s1 = inlined_call_operand.vmem [shape: s32[2,1,256], index: 1, kind: input, shape index: {}]   ;;  %s634_s2 = inlined_call_operand.vmem [shape: f32[2,16,128], index: 2, kind: output, shape index: {}]  }
   0x1   :  { %s578_s11 = smov 0  }
   0x2 LB: > { %s24_s12 = sadd.s32 1, %s552_s10  ;;  %p485_p0 = scmp.ge.s32.totalorder %s556_s11, 1  ;;  %s556_s11 = sphi %s578_s11, %s12_s11   ;;  %s552_s10 = sphi %s576_s10, %s636_s10   ;;  %s548_s9 = sphi %s574_s9, %s635_s9  }
   0x3   : > { %p26_p1 = scmp.ge.s32.totalorder %s24_s12, 2  ;;  %p147_p2 = scmp.lt.s32.totalorder %s556_s11, 3 }
   0x5   : > { %s638_s12 = smov (%p26_p1, %s24_s12), 0  ;;  %p148_p3 = pnand %p485_p0, %p147_p2 }
   0x6   : > { %p182_p4 = scmp.lt.s32.totalorder (!%p148_p3), %s548_s9, 1  ;;  %v222_v0 = vlaneseq (!%p148_p3)  ;;  %v558_v10 = vmov (!%p148_p3), 0.0  }
   0x7   : > { %151 = sbr.rel (%p148_p3) target bundleno = 83 (0x53), region = 28 }
   0x8   : > { %v223_v1 = vshrl.u32 (!%p148_p3), %v222_v0, 7 }
   0xa   : > { %v230_v2 = vsub.s32 (!%p148_p3), 1, %v223_v1  ;;  %v598_v3 = vsub.s32 (!%p148_p3), 0, %v223_v1  ;;  %v258_v16 = vsub.s32 (!%p148_p3), 4, %v223_v1 }
   0xe   : > { %s640_s9 = smov (!%p182_p4, %s548_s9), 1 }
   0xf   : > { %s501_s13 = sshll.u32 %s640_s9, 3  ;;  %s488_s14 = sshll.u32 %s640_s9, 1 }
  0x10   : > { %s189_s17 = scalar_lea.vmem %s632_s0, %s501_s13  ;;  %s198_s20 = scalar_lea.vmem %s633_s1, %s488_s14 }
  0x11   : > { %s502_s21 = sshll.u32 %s640_s9, 4  ;;  %v211_v4 = vld [vmem:[%s189_s17] sm:$0xff] }
  0x12   : > { %v212_v5 = vld [vmem:[%s198_s20] sm:$0x3]  ;;  %s603_s24 = scalar_lea.vmem %s634_s2, %s502_s21  ;;  %v493_v8 = vrot.slane %v211_v4, 9  ;;  %v494_v9 = vrot.slane %v211_v4, 10  ;;  %v495_v12 = vrot.slane %v211_v4, 11 }
  0x13   : > { %v227_v6 = vrot.slane %v212_v5, %v598_v3  ;;  %v231_v7 = vrot.slane %v212_v5, %v230_v2  ;;  %209 = vst [vmem:[%s603_s24] sm:$0xff] %v558_v10  ;;  %210 = vst [vmem:[%s603_s24 + $0x8] sm:$0xff] %v558_v10 }
  0x14   : > { %v242_v11 = vmax.f32 %v211_v4, %v493_v8 }
  0x15   : > { %vm232_vm0 = vcmp.eq.s32.totalorder %v223_v1, %v227_v6  ;;  %vm233_vm1 = vcmp.eq.s32.totalorder %v223_v1, %v231_v7 }
  0x16   : > { %v491_v13 = vsel %vm232_vm0, 1.0, %v558_v10  ;;  %v492_v14 = vsel %vm233_vm1, 1.0, %v558_v10  ;;  %v246_v15 = vmax.f32 %v242_v11, %v494_v9 }
  0x17   : > { %v390_v17 = vadd.f32 %v492_v14, %v491_v13  ;;  %v342_v59 = vcombine.low %v491_v13, %v492_v14 }
  0x18   : > { %v250_v18 = vmax.f32 %v246_v15, %v495_v12 }
  0x1a   : > { %v255_v19 = vrot.slane %v250_v18, %v598_v3  ;;  %v259_v20 = vrot.slane %v250_v18, %v258_v16  ;;  %v389_v21 = vld [vmem:[%s603_s24 + $0x8] sm:$0xf]  ;;  %v393_v63 = vld [vmem:[%s603_s24 + $0xc] sm:$0x1]  ;;  %v385_v6 = vld [vmem:[%s603_s24 + $0x4] sm:$0xf] }
  0x1b   : > { %v391_v22 = vadd.f32 %v390_v17, %v389_v21  ;;  %v381_v9 = vld [vmem:[%s603_s24] sm:$0xf] }
  0x1c   : > { %v265_v23 = vrot.slane %v255_v19, %v598_v3  ;;  %v269_v24 = vrot.slane %v259_v20, %v598_v3 }
  0x1d   : > { %392 = vst [vmem:[%s603_s24 + $0x8] sm:$0xf] %v391_v22 }
  0x1e   : > { %v272_v25 = vcombine.low %v265_v23, %v269_v24 }
  0x20   : > { %v274_v26 = vsub.f32 %v211_v4, %v272_v25 }
  0x22   : > { %v275_v27 = vmul.f32 1.442695, %v274_v26  ;;  %v316_v28 = vcombine.high %v274_v26, %v274_v26  ;;  %v318_v29 = vmul.f32 %v491_v13, %v274_v26 }
  0x24   : > { %528 = vpow2.f32 %v275_v27  ;;  %v319_v30 = vmul.f32 %v492_v14, %v316_v28  ;;  %v322_v34 = vrot.slane %v318_v29, 1  ;;  %v328_v41 = vrot.slane %v318_v29, 2 }
  0x25   : > { %v334_v48 = vrot.slane %v318_v29, 3 }
  0x26   : > { %v323_v35 = vrot.slane %v319_v30, 1  ;;  %v326_v39 = vadd.f32 %v322_v34, %v318_v29  ;;  %v329_v42 = vrot.slane %v319_v30, 2  ;;  %v335_v49 = vrot.slane %v319_v30, 3 }
  0x28   : > { %v327_v40 = vadd.f32 %v323_v35, %v319_v30  ;;  %v332_v46 = vadd.f32 %v328_v41, %v326_v39 }
  0x2a   : > { %v333_v47 = vadd.f32 %v329_v42, %v327_v40  ;;  %v338_v53 = vadd.f32 %v334_v48, %v332_v46 }
  0x2c   : > { %v339_v54 = vadd.f32 %v335_v49, %v333_v47 }
  0x2e   : > { %v529_v31 = vpop.eup %528  ;;  %v365_v55 = vcombine.low %v338_v53, %v339_v54 }
  0x2f   : > { %v496_v32 = vrot.slane %v529_v31, 9  ;;  %v497_v33 = vrot.slane %v529_v31, 10  ;;  %v498_v37 = vrot.slane %v529_v31, 11 }
  0x31   : > { %v281_v36 = vadd.f32 %v529_v31, %v496_v32 }
  0x33   : > { %v285_v38 = vadd.f32 %v497_v33, %v281_v36 }
  0x35   : > { %v289_v43 = vadd.f32 %v498_v37, %v285_v38 }
  0x37   : > { %v294_v44 = vrot.slane %v289_v43, %v598_v3  ;;  %v298_v45 = vrot.slane %v289_v43, %v258_v16  ;;  %530 = vlog2.f32 %v289_v43 }
  0x39   : > { %v304_v50 = vrot.slane %v294_v44, %v598_v3  ;;  %v308_v51 = vrot.slane %v298_v45, %v598_v3 }
  0x3b   : > { %v311_v52 = vcombine.low %v304_v50, %v308_v51 }
  0x3d   : > { %532 = vrcp.f32 %v311_v52 }
  0x41   : > { %v531_v56 = vpop.eup %530 }
  0x42   : > { %v362_v57 = vmul.f32 0.6931472, %v531_v56 }
  0x44   : > { %v367_v58 = vsub.f32 %v362_v57, %v365_v55 }
  0x46   : > { %v372_v60 = vrot.slane %v367_v58, %v598_v3  ;;  %v376_v61 = vrot.slane %v367_v58, %v258_v16 }
  0x47   : > { %v533_v62 = vpop.eup %532 }
  0x48   : > { %v314_v0 = vmul.f32 %v533_v62, %v529_v31  ;;  %v394_v1 = vadd.f32 %v376_v61, %v372_v60 }
  0x4a   : > { %v344_v2 = vmul.f32 %v342_v59, %v314_v0  ;;  %v355_v4 = vcombine.high %v314_v0, %v314_v0  ;;  %v395_v5 = vadd.f32 %v394_v1, %v393_v63 }
  0x4c   : > { %v350_v7 = vcombine.high %v344_v2, %v344_v2  ;;  %v386_v8 = vadd.f32 %v355_v4, %v314_v0  ;;  %396 = vst [vmem:[%s603_s24 + $0xc] sm:$0x1] %v395_v5 }
  0x4e   : > { %v382_v10 = vadd.f32 %v350_v7, %v344_v2  ;;  %v387_v11 = vadd.f32 %v386_v8, %v385_v6 }
  0x50   : > { %v383_v12 = vadd.f32 %v382_v10, %v381_v9  ;;  %388 = vst [vmem:[%s603_s24 + $0x4] sm:$0xf] %v387_v11 }
  0x52   : > { %384 = vst [vmem:[%s603_s24] sm:$0xf] %v383_v12 }
  0x53 PF: > { %s12_s11 = sadd.s32 1, %s556_s11   ;;  %s635_s9 = smov %s552_s10 }
  0x54   : > { %p9_p5 = scmp.ge.s32.totalorder %s12_s11, 4   ;;  %s636_s10 = smov %s638_s12 }
  0x56   :  { %11 = sbr.rel (!%p9_p5) target bundleno = 2 (0x2), region = 65 }

</bundles_post_ra>
